<compile_context>
chip_gen: v5e
topology: v5e:2x2
jax: 0.10.0
libtpu: 0.0.40
codegen_flags: <defaults>
</compile_context>

<pallas_src>
import jax
import jax.numpy as jnp
from jax.experimental import pallas as pl
from jax.experimental.pallas import tpu as pltpu


def _discriminator_kernel(x_ref, l_ref, w1x_ref, w1l_ref, b1_ref,
                          w2_ref, b2_ref, w3_ref, b3_ref, o_ref):
    # fc1, with the concat fused:  [x | labels] @ [[w1_x], [w1_l]]
    h = (jnp.dot(x_ref[...], w1x_ref[...], preferred_element_type=jnp.float32)
         + jnp.dot(l_ref[...], w1l_ref[...], preferred_element_type=jnp.float32)
         + b1_ref[...])
    h = jnp.maximum(h, 0.2 * h)                      # LeakyReLU(0.2)

    # fc2 + LeakyReLU(0.2)
    h = jnp.dot(h, w2_ref[...], preferred_element_type=jnp.float32) + b2_ref[...]
    h = jnp.maximum(h, 0.2 * h)

    # fc3 + Sigmoid:  exp on EUP, approx reciprocal also on EUP (VPU stays free)
    logits = jnp.dot(h, w3_ref[...], preferred_element_type=jnp.float32) + b3_ref[...]
    o_ref[...] = pl.reciprocal(1.0 + jnp.exp(-logits), approx=True).astype(o_ref.dtype)


def _pick_batch_tile(batch):
    """Largest power-of-two batch tile (>=8 sublanes) that divides the batch."""
    for tb in (1024, 512, 256, 128, 64, 32, 16, 8):
        if batch % tb == 0:
            return tb
    return batch  # tiny / irregular batch: single full-array block


def discriminator_forward(x, labels, params):
    """Pallas equivalent of Discriminator.forward(x, labels)."""
    w1, b1, w2, b2, w3, b3 = params
    x = x.astype(jnp.float32)
    labels = labels.astype(jnp.float32)

    B, x_dim = x.shape
    l_dim = labels.shape[1]
    in_dim, hidden = w1.shape
    assert in_dim == x_dim + l_dim, "w1 must cover the concatenated feature dim"
    out_dim = w3.shape[1]

    # Split fc1's weight row-wise so the concat happens inside the MXU.
    w1_x = w1[:x_dim]
    w1_l = w1[x_dim:]

    tb = _pick_batch_tile(B)
    grid = (B // tb,)

    batch_map = lambda i: (i, 0)   # tiled over batch
    const_map = lambda i: (0, 0)   # weights/biases resident across the grid

    flops = 2 * B * (in_dim * hidden + hidden * hidden + hidden * out_dim)
    bytes_accessed = 4 * (B * (x_dim + l_dim + out_dim)
                          + in_dim * hidden + hidden
                          + hidden * hidden + hidden
                          + hidden * out_dim + out_dim)

    # NOTE: out_dim == 1 means the output stores use 1 of 128 lanes; acceptable
    # only because this tensor is tiny — do not carry this layout into a fused
    # loss kernel.
    return pl.pallas_call(
        _discriminator_kernel,
        out_shape=jax.ShapeDtypeStruct((B, out_dim), jnp.float32),
        grid=grid,
        in_specs=[
            pl.BlockSpec((tb, x_dim), batch_map),
            pl.BlockSpec((tb, l_dim), batch_map),
            pl.BlockSpec((x_dim, hidden), const_map),
            pl.BlockSpec((l_dim, hidden), const_map),
            pl.BlockSpec((1, hidden), const_map),
            pl.BlockSpec((hidden, hidden), const_map),
            pl.BlockSpec((1, hidden), const_map),
            pl.BlockSpec((hidden, out_dim), const_map),
            pl.BlockSpec((1, out_dim), const_map),
        ],
        out_specs=pl.BlockSpec((tb, out_dim), batch_map),
        compiler_params=pltpu.CompilerParams(
            dimension_semantics=("parallel",)),
        cost_estimate=pl.CostEstimate(
            flops=flops,
            transcendentals=B * out_dim,
            bytes_accessed=bytes_accessed),
    )(x, labels, w1_x, w1_l, b1, w2, b2, w3, b3)


def init_params(key, input_size, hidden_dim, output_size):
    """Deterministic param init. Weights stored as [in, out]; biases as [1, out]."""
    ks = jax.random.split(key, 6)

    def linear(kw, kb, fan_in, fan_out):
        # Mimic PyTorch nn.Linear default: U(-1/sqrt(fan_in), 1/sqrt(fan_in))
        bound = 1.0 / jnp.sqrt(jnp.float32(fan_in))
        w = jax.random.uniform(kw, (fan_in, fan_out), jnp.float32, -bound, bound)
        b = jax.random.uniform(kb, (1, fan_out), jnp.float32, -bound, bound)
        return w, b

    w1, b1 = linear(ks[0], ks[1], input_size, hidden_dim)
    w2, b2 = linear(ks[2], ks[3], hidden_dim, hidden_dim)
    w3, b3 = linear(ks[4], ks[5], hidden_dim, output_size)
    return (w1, b1, w2, b2, w3, b3)


def _reference_forward(x, labels, params):
    """Pure-JAX reference matching the PyTorch module (for correctness check)."""
    w1, b1, w2, b2, w3, b3 = params
    xin = jnp.concatenate([x, labels], axis=1)
    h = xin @ w1 + b1
    h = jnp.where(h > 0, h, 0.2 * h)
    h = h @ w2 + b2
    h = jnp.where(h > 0, h, 0.2 * h)
    return jax.nn.sigmoid(h @ w3 + b3)


if __name__ == "__main__":
    key = jax.random.PRNGKey(0)
    k_x, k_l, k_p = jax.random.split(key, 3)

    # Small shapes: batch=8, x features=16, label features=16 -> input_size=32
    B, X_DIM, L_DIM = 8, 16, 16
    INPUT_SIZE = X_DIM + L_DIM   # Linear's input_size covers the concatenated vector
    HIDDEN_DIM = 32
    OUTPUT_SIZE = 1

    x = jax.random.normal(k_x, (B, X_DIM), jnp.float32)
    labels = jax.random.normal(k_l, (B, L_DIM), jnp.float32)
    params = init_params(k_p, INPUT_SIZE, HIDDEN_DIM, OUTPUT_SIZE)

    out = discriminator_forward(x, labels, params)
    out = jax.block_until_ready(out)

    ref = _reference_forward(x, labels, params)
    assert out.shape == (B, OUTPUT_SIZE)
    # approx reciprocal (EUP) has ~2^-12 relative error; allow a small tolerance
    assert bool(jnp.allclose(out, ref, atol=2e-3, rtol=2e-3))
    assert bool(jnp.all((out >= -1e-5) & (out <= 1.0 + 1e-5)))
    print("KERNEL_OK")
</pallas_src>

<mosaic_0001>
module attributes {stable_mosaic.version = 11 : i64} {
  func.func @_discriminator_kernel(%arg0: i32, %arg1: memref<8x16xf32, #tpu.memory_space<vmem>>, %arg2: memref<8x16xf32, #tpu.memory_space<vmem>>, %arg3: memref<16x32xf32, #tpu.memory_space<vmem>>, %arg4: memref<16x32xf32, #tpu.memory_space<vmem>>, %arg5: memref<1x32xf32, #tpu.memory_space<vmem>>, %arg6: memref<32x32xf32, #tpu.memory_space<vmem>>, %arg7: memref<1x32xf32, #tpu.memory_space<vmem>>, %arg8: memref<32x1xf32, #tpu.memory_space<vmem>>, %arg9: memref<1x1xf32, #tpu.memory_space<vmem>>, %arg10: memref<8x1xf32, #tpu.memory_space<vmem>>) attributes {dimension_semantics = [#tpu.dimension_semantics<parallel>], iteration_bounds = array<i64: 1>, scalar_prefetch = 0 : i64, scratch_operands = 0 : i64, tpu.core_type = #tpu.core_type<tc>, window_params = [{transform_indices = @transform_0, window_bounds = array<i64: 8, 16>}, {transform_indices = @transform_1, window_bounds = array<i64: 8, 16>}, {pipeline_mode = #tpu.pipeline_mode<synchronous>, transform_indices = @transform_2, window_bounds = array<i64: 16, 32>}, {pipeline_mode = #tpu.pipeline_mode<synchronous>, transform_indices = @transform_3, window_bounds = array<i64: 16, 32>}, {pipeline_mode = #tpu.pipeline_mode<synchronous>, transform_indices = @transform_4, window_bounds = array<i64: 1, 32>}, {pipeline_mode = #tpu.pipeline_mode<synchronous>, transform_indices = @transform_5, window_bounds = array<i64: 32, 32>}, {pipeline_mode = #tpu.pipeline_mode<synchronous>, transform_indices = @transform_6, window_bounds = array<i64: 1, 32>}, {pipeline_mode = #tpu.pipeline_mode<synchronous>, transform_indices = @transform_7, window_bounds = array<i64: 32, 1>}, {pipeline_mode = #tpu.pipeline_mode<synchronous>, transform_indices = @transform_8, window_bounds = array<i64: 1, 1>}, {transform_indices = @transform_9, window_bounds = array<i64: 8, 1>}]} {
    %c0 = arith.constant 0 : index
    %c0_0 = arith.constant 0 : index
    %0 = vector.load %arg1[%c0, %c0_0] : memref<8x16xf32, #tpu.memory_space<vmem>>, vector<8x16xf32>
    %c0_1 = arith.constant 0 : index
    %c0_2 = arith.constant 0 : index
    %1 = vector.load %arg3[%c0_1, %c0_2] : memref<16x32xf32, #tpu.memory_space<vmem>>, vector<16x32xf32>
    %cst = arith.constant dense<0.000000e+00> : vector<8x32xf32>
    %2 = tpu.matmul %0, %1, %cst {dimension_numbers = #tpu.dot_dimension_numbers<[1], [0], [0], [1], [0, 0, 1, 1], [], []>} : vector<8x16xf32>, vector<16x32xf32>, vector<8x32xf32> -> vector<8x32xf32>
    %c0_3 = arith.constant 0 : index
    %c0_4 = arith.constant 0 : index
    %3 = vector.load %arg2[%c0_3, %c0_4] : memref<8x16xf32, #tpu.memory_space<vmem>>, vector<8x16xf32>
    %c0_5 = arith.constant 0 : index
    %c0_6 = arith.constant 0 : index
    %4 = vector.load %arg4[%c0_5, %c0_6] : memref<16x32xf32, #tpu.memory_space<vmem>>, vector<16x32xf32>
    %cst_7 = arith.constant dense<0.000000e+00> : vector<8x32xf32>
    %5 = tpu.matmul %3, %4, %cst_7 {dimension_numbers = #tpu.dot_dimension_numbers<[1], [0], [0], [1], [0, 0, 1, 1], [], []>} : vector<8x16xf32>, vector<16x32xf32>, vector<8x32xf32> -> vector<8x32xf32>
    %6 = arith.addf %2, %5 : vector<8x32xf32>
    %c0_8 = arith.constant 0 : index
    %c0_9 = arith.constant 0 : index
    %7 = vector.load %arg5[%c0_8, %c0_9] : memref<1x32xf32, #tpu.memory_space<vmem>>, vector<1x32xf32>
    %8 = vector.broadcast %7 : vector<1x32xf32> to vector<8x32xf32>
    %9 = arith.addf %6, %8 : vector<8x32xf32>
    %cst_10 = arith.constant 2.000000e-01 : f32
    %10 = vector.broadcast %cst_10 : f32 to vector<8x32xf32>
    %11 = arith.mulf %10, %9 : vector<8x32xf32>
    %12 = arith.maximumf %9, %11 : vector<8x32xf32>
    %c0_11 = arith.constant 0 : index
    %c0_12 = arith.constant 0 : index
    %13 = vector.load %arg6[%c0_11, %c0_12] : memref<32x32xf32, #tpu.memory_space<vmem>>, vector<32x32xf32>
    %cst_13 = arith.constant dense<0.000000e+00> : vector<8x32xf32>
    %14 = tpu.matmul %12, %13, %cst_13 {dimension_numbers = #tpu.dot_dimension_numbers<[1], [0], [0], [1], [0, 0, 1, 1], [], []>} : vector<8x32xf32>, vector<32x32xf32>, vector<8x32xf32> -> vector<8x32xf32>
    %c0_14 = arith.constant 0 : index
    %c0_15 = arith.constant 0 : index
    %15 = vector.load %arg7[%c0_14, %c0_15] : memref<1x32xf32, #tpu.memory_space<vmem>>, vector<1x32xf32>
    %16 = vector.broadcast %15 : vector<1x32xf32> to vector<8x32xf32>
    %17 = arith.addf %14, %16 : vector<8x32xf32>
    %cst_16 = arith.constant 2.000000e-01 : f32
    %18 = vector.broadcast %cst_16 : f32 to vector<8x32xf32>
    %19 = arith.mulf %18, %17 : vector<8x32xf32>
    %20 = arith.maximumf %17, %19 : vector<8x32xf32>
    %c0_17 = arith.constant 0 : index
    %c0_18 = arith.constant 0 : index
    %21 = vector.load %arg8[%c0_17, %c0_18] : memref<32x1xf32, #tpu.memory_space<vmem>>, vector<32x1xf32>
    %cst_19 = arith.constant dense<0.000000e+00> : vector<8x1xf32>
    %22 = tpu.matmul %20, %21, %cst_19 {dimension_numbers = #tpu.dot_dimension_numbers<[1], [0], [0], [1], [0, 0, 1, 1], [], []>} : vector<8x32xf32>, vector<32x1xf32>, vector<8x1xf32> -> vector<8x1xf32>
    %c0_20 = arith.constant 0 : index
    %c0_21 = arith.constant 0 : index
    %23 = vector.load %arg9[%c0_20, %c0_21] : memref<1x1xf32, #tpu.memory_space<vmem>>, vector<1x1xf32>
    %24 = vector.broadcast %23 : vector<1x1xf32> to vector<8x1xf32>
    %25 = arith.addf %22, %24 : vector<8x1xf32>
    %cst_22 = arith.constant 0.000000e+00 : f32
    %26 = vector.broadcast %cst_22 : f32 to vector<8x1xf32>
    %27 = arith.subf %26, %25 : vector<8x1xf32>
    %28 = math.exp %27 : vector<8x1xf32>
    %cst_23 = arith.constant 1.000000e+00 : f32
    %29 = vector.broadcast %cst_23 : f32 to vector<8x1xf32>
    %30 = arith.addf %29, %28 : vector<8x1xf32>
    %31 = tpu.reciprocal %30 {approx = true} : vector<8x1xf32> -> vector<8x1xf32>
    %c0_24 = arith.constant 0 : index
    %c0_25 = arith.constant 0 : index
    %32 = vector.load %arg10[%c0_24, %c0_25] : memref<8x1xf32, #tpu.memory_space<vmem>>, vector<8x1xf32>
    tpu.vector_store %arg10[%c0_24, %c0_25], %31 {strides = array<i32>} : memref<8x1xf32, #tpu.memory_space<vmem>>, vector<8x1xf32>,
    return
  }
  func.func @transform_0(%arg0: i32) -> (i32, i32) {
    %c0_i32 = arith.constant 0 : i32
    %c0_i32_0 = arith.constant 0 : i32
    return %arg0, %c0_i32 : i32, i32
  }
  func.func @transform_1(%arg0: i32) -> (i32, i32) {
    %c0_i32 = arith.constant 0 : i32
    %c0_i32_0 = arith.constant 0 : i32
    return %arg0, %c0_i32 : i32, i32
  }
  func.func @transform_2(%arg0: i32) -> (i32, i32) {
    %c0_i32 = arith.constant 0 : i32
    %c0_i32_0 = arith.constant 0 : i32
    %c0_i32_1 = arith.constant 0 : i32
    return %c0_i32, %c0_i32_0 : i32, i32
  }
  func.func @transform_3(%arg0: i32) -> (i32, i32) {
    %c0_i32 = arith.constant 0 : i32
    %c0_i32_0 = arith.constant 0 : i32
    %c0_i32_1 = arith.constant 0 : i32
    return %c0_i32, %c0_i32_0 : i32, i32
  }
  func.func @transform_4(%arg0: i32) -> (i32, i32) {
    %c0_i32 = arith.constant 0 : i32
    %c0_i32_0 = arith.constant 0 : i32
    %c0_i32_1 = arith.constant 0 : i32
    return %c0_i32, %c0_i32_0 : i32, i32
  }
  func.func @transform_5(%arg0: i32) -> (i32, i32) {
    %c0_i32 = arith.constant 0 : i32
    %c0_i32_0 = arith.constant 0 : i32
    %c0_i32_1 = arith.constant 0 : i32
    return %c0_i32, %c0_i32_0 : i32, i32
  }
  func.func @transform_6(%arg0: i32) -> (i32, i32) {
    %c0_i32 = arith.constant 0 : i32
    %c0_i32_0 = arith.constant 0 : i32
    %c0_i32_1 = arith.constant 0 : i32
    return %c0_i32, %c0_i32_0 : i32, i32
  }
  func.func @transform_7(%arg0: i32) -> (i32, i32) {
    %c0_i32 = arith.constant 0 : i32
    %c0_i32_0 = arith.constant 0 : i32
    %c0_i32_1 = arith.constant 0 : i32
    return %c0_i32, %c0_i32_0 : i32, i32
  }
  func.func @transform_8(%arg0: i32) -> (i32, i32) {
    %c0_i32 = arith.constant 0 : i32
    %c0_i32_0 = arith.constant 0 : i32
    %c0_i32_1 = arith.constant 0 : i32
    return %c0_i32, %c0_i32_0 : i32, i32
  }
  func.func @transform_9(%arg0: i32) -> (i32, i32) {
    %c0_i32 = arith.constant 0 : i32
    %c0_i32_0 = arith.constant 0 : i32
    return %arg0, %c0_i32 : i32, i32
  }
}

</mosaic_0001>

<bundles_post_ra>
// kernel: tpu_custom_call.1
= control target key start
LH: loop header
LB: loop body
LE: loop exit
PB: predicated region body
PF: predicated region fallthrough
CT: control target
= control target key end

     0   :  { %s457_s0 = inlined_call_operand.hbm [shape: f32[8,16], index: 0, kind: input, shape index: {}]   ;;  %s458_s1 = inlined_call_operand.hbm [shape: f32[8,16], index: 1, kind: input, shape index: {}]   ;;  %s459_s2 = inlined_call_operand.hbm [shape: f32[16,32], index: 2, kind: input, shape index: {}]   ;;  %s460_s3 = inlined_call_operand.hbm [shape: f32[16,32], index: 3, kind: input, shape index: {}]   ;;  %s461_s4 = inlined_call_operand.vmem [shape: f32[1,32], index: 4, kind: input, shape index: {}]   ;;  %s462_s5 = inlined_call_operand.vmem [shape: f32[32,32], index: 5, kind: input, shape index: {}]   ;;  %s463_s6 = inlined_call_operand.vmem [shape: f32[1,32], index: 6, kind: input, shape index: {}]   ;;  %s464_s7 = inlined_call_operand.vmem [shape: f32[32,1], index: 7, kind: input, shape index: {}]   ;;  %s465_s8 = inlined_call_operand.<no memory space> [shape: f32[1,1], index: 8, kind: input, shape index: {}]   ;;  %s466_s9 = inlined_call_operand.vmem [shape: f32[8,1], index: 9, kind: output, shape index: {}]  }
   0x1   :  { %v14_v0 = vstv %s465_s8 }
   0x2   :  { %15 = vst [vmem:[#allocation2] sm:$0x1] %v14_v0 }
   0x3   :  { %16 = vsyncpa [#allocation4], 0 }
   0x4   :  { %17 = vsyncpa [#allocation6], 0  ;;  %s35_s13 = sshll.u32 %s458_s1, 4  ;;  %s36_s13 = int_to_ptr.hbm [resolvable:$true] %s35_s13 }
   0x5   :  { %18 = vsyncpa [#allocation9], 0  ;;  %s351_s14 = smov [#allocation5]   ;;  %s24_s18 = sshll.u32 %s457_s0, 4  ;;  %s25_s18 = int_to_ptr.hbm [resolvable:$true] %s24_s18 }
   0x6   :  { %s37_s15 = sshll.u32 %s351_s14, 4  ;;  %s352_s19 = smov [#allocation3]   ;;  %s38_s15 = int_to_ptr.vmem [resolvable:$true] %s37_s15 }
   0x7   :  { %40 = dma.hbm_to_vmem [thread:$0]  %s36_s13, 128, %s38_s15, [#allocation6]  }
   0x8   :  { %s26_s8 = sshll.u32 %s352_s19, 4  ;;  %s45_s22 = sshll.u32 %s459_s2, 4  ;;  %s27_s8 = int_to_ptr.vmem [resolvable:$true] %s26_s8  ;;  %s46_s22 = int_to_ptr.hbm [resolvable:$true] %s45_s22 }
   0x9   :  { %29 = dma.hbm_to_vmem [thread:$0]  %s25_s18, 128, %s27_s8, [#allocation4]  }
   0xa   :  { %s353_s1 = smov [#allocation7]   ;;  %s58_s26 = sshll.u32 %s460_s3, 4  ;;  %s59_s26 = int_to_ptr.hbm [resolvable:$true] %s58_s26 }
   0xb   :  { %s47_s23 = sshll.u32 %s353_s1, 4  ;;  %s354_s27 = smov 128   ;;  %s48_s23 = int_to_ptr.vmem [resolvable:$true] %s47_s23 }
   0xc   :  { %s355_s0 = smov 8   ;;  %s356_s28 = smov [#allocation8]  }
   0xd   :  { %53 = dma.hbm_to_vmem [thread:$0]  %s46_s22, 256, %s48_s23, [#allocation6], %s354_s27, %s354_s27, %s355_s0  }
   0xe   :  { %s60_s29 = sshll.u32 %s356_s28, 4  ;;  %s61_s29 = int_to_ptr.vmem [resolvable:$true] %s60_s29 }
   0xf   :  { %66 = dma.hbm_to_vmem [thread:$0]  %s59_s26, 256, %s61_s29, [#allocation9], %s354_s27, %s354_s27, %s355_s0  }
  0x10   :  { %345 = dma.done.wait [#allocation4], 128  }
  0x11   :  { %346 = vsyncadd [#allocation4], 4294967168 }
  0x12   :  { %347 = dma.done.wait [#allocation6], 384  }
  0x13   :  { %348 = vsyncadd [#allocation6], 4294966912 }
  0x14   :  { %349 = dma.done.wait [#allocation9], 256  }
  0x15   :  { %350 = vsyncadd [#allocation9], 4294967040  ;;  %v98_v1 = vld [vmem:[#allocation8 + $0x8] sm:$0xff]  ;;  %v95_v2 = vld [vmem:[#allocation7 + $0x8] sm:$0xff]  ;;  %vm99_vm0 = vcmask 130048   ;;  %vm161_vm1 = vcmask 261120  }
  0x16   :  { %v97_v3 = vld [vmem:[#allocation8] sm:$0xff]  ;;  %117 = vmatpush.msra.mxu0 %v98_v1  ;;  %140 = vmatpush.msra.mxu1 %v95_v2  ;;  %v94_v4 = vld [vmem:[#allocation7] sm:$0xff]  ;;  %v96_v5 = vld [vmem:[#allocation5] sm:$0xff]  ;;  %vm223_vm2 = vcmask 7168  }
  0x17   :  { %v93_v6 = vld [vmem:[#allocation3] sm:$0xff]  ;;  %v156_v7 = vld [vmem:[%s462_s5 + $0x18] sm:$0xff]  ;;  %v155_v8 = vld [vmem:[%s462_s5 + $0x10] sm:$0xff] }
  0x18   :  { %118 = vmatpush.msra.mxu0 %v97_v3  ;;  %141 = vmatpush.msra.mxu1 %v94_v4  ;;  %v154_v9 = vld [vmem:[%s462_s5 + $0x8] sm:$0xff]  ;;  %v153_v10 = vld [vmem:[%s462_s5] sm:$0xff]  ;;  %v190_v18 = vld [vmem:[%s464_s7 + $0x18] sm:$0xff] }
  0x19   :  { %232 = vmatmul.msk.f32.vlgmr.msra.gmra.mxu0 %vm99_vm0, %v96_v5  ;;  %233 = vmatmul.msk.f32.vlgmr.msra.gmra.mxu1 %vm99_vm0, %v93_v6  ;;  %v242_v11 = vld [vmem:[%s461_s4] ss:$0 sm:$0xff]  ;;  %v189_v19 = vld [vmem:[%s464_s7 + $0x10] sm:$0xff]  ;;  %v188_v20 = vld [vmem:[%s464_s7 + $0x8] sm:$0xff] }
  0x1a   :  { %177 = vmatpush.msra.mxu2 %v156_v7  ;;  %210 = vmatpush.msra.mxu3 %v190_v18  ;;  %v187_v21 = vld [vmem:[%s464_s7] sm:$0xff] }
  0x1b   :  { %v243_v22 = vld [vmem:[%s463_s6] ss:$0 sm:$0xff] }
  0x1c   :  { %178 = vmatpush.msra.mxu2 %v155_v8  ;;  %211 = vmatpush.msra.mxu3 %v189_v19  ;;  %v244_v27 = vld [vmem:[#allocation2] ss:$0 sm:$0xff] }
  0x1e   :  { %179 = vmatpush.msra.mxu2 %v154_v9  ;;  %212 = vmatpush.msra.mxu3 %v188_v20 }
  0x20   :  { %180 = vmatpush.msra.mxu2 %v153_v10  ;;  %213 = vmatpush.msra.mxu3 %v187_v21 }
  0x96   :  { %v120_v12 = vpop.f32.mrf.mxu0  ;;  %v143_v13 = vpop.f32.mrf.mxu1 }
  0x97   :  { %v144_v14 = vadd.f32 %v143_v13, %v120_v12 }
  0x99   :  { %v150_v15 = vadd.f32 %v242_v11, %v144_v14 }
  0x9b   :  { %v151_v16 = vmul.f32 0.2, %v150_v15 }
  0x9d   :  { %v152_v17 = vmax.f32 %v150_v15, %v151_v16 }
  0x9f   :  { %234 = vmatmul.msk.f32.vlgmr.msra.gmra.mxu2 %vm161_vm1, %v152_v17 }
 0x122   :  { %v182_v23 = vpop.f32.mrf.mxu2 }
 0x123   :  { %v183_v24 = vadd.f32 %v243_v22, %v182_v23 }
 0x125   :  { %v185_v25 = vmul.f32 0.2, %v183_v24 }
 0x127   :  { %v186_v26 = vmax.f32 %v183_v24, %v185_v25 }
 0x129   :  { %235 = vmatmul.msk.f32.vlgmr.msra.gmra.mxu3 %vm161_vm1, %v186_v26 }
 0x1ac   :  { %v215_v28 = vpop.f32.mrf.mxu3 }
 0x1ad   :  { %v216_v29 = vadd.f32 %v244_v27, %v215_v28 }
 0x1af   :  { %v218_v30 = vsub.f32 0.0, %v216_v29 }
 0x1b1   :  { %v219_v31 = vmul.f32 1.442695, %v218_v30 }
 0x1b3   :  { %245 = vpow2.f32 %v219_v31 }
 0x1b9   :  { %v246_v32 = vpop.eup %245 }
 0x1ba   :  { %v221_v33 = vadd.f32 1.0, %v246_v32 }
 0x1bc   :  { %247 = vrcp.f32 %v221_v33 }
 0x1c2   :  { %v248_v34 = vpop.eup %247 }
 0x1c3   :  { %224 = vst.msk [vmem:[%s466_s9] sm:$0xff] %vm223_vm2, %v248_v34 }
 0x1c4   :  { %229 = vsyncpa [#allocation4], 1 }
 0x1c5   :  { %230 = vsyncpa [#allocation6], 1 }
 0x1c6   :  { %231 = vsyncpa [#allocation9], 1 }

</bundles_post_ra>
